<compile_context>
chip_gen: v7x
topology: tpu7x:2x2x1
jax: 0.10.0
libtpu: 0.0.40
codegen_flags: <defaults>
</compile_context>

<pallas_src>
import functools
import math

import jax
import jax.numpy as jnp
from jax.experimental import pallas as pl
from jax.experimental.pallas import tpu as pltpu


def _make_kernel(Bt: int, k: int, d_model: int, nhead: int, head_dim: int):
    three_hd = 3 * head_dim

    def kernel(content_ref, phase_ref, wqkv_ref, bqkv_ref, wo3_ref, bo_ref,
               scale_ref, out_ref, attn_ref):
        # ---- fused QKV projection: ONE MXU matmul for Q, K and V ------------
        x = content_ref[...].astype(jnp.float32).reshape(Bt * k, d_model)
        qkv = jnp.dot(x, wqkv_ref[...],
                      preferred_element_type=jnp.float32) + bqkv_ref[0]
        # Column layout (built in the wrapper): for head h -> [q_h | k_h | v_h],
        # with the 1/sqrt(head_dim) query scaling already folded into Wq/bq.

        # ---- head-major slab: one stack of static slices ---------------------
        slab = jnp.stack(
            [qkv[b * k:(b + 1) * k, h * three_hd:(h + 1) * three_hd]
             for b in range(Bt) for h in range(nhead)],
            axis=0)                                    # [Bt*nhead, k, 3*head_dim]
        q3 = slab[:, :, 0:head_dim]                    # already scaled by 1/sqrt(hd)
        k3 = slab[:, :, head_dim:2 * head_dim]
        v3 = slab[:, :, 2 * head_dim:3 * head_dim]

        # ---- phase-similarity bias -------------------------------------------
        p = phase_ref[...].astype(jnp.float32)         # [Bt, k, phase_dim]
        sumsq = jnp.sum(p * p, axis=-1, keepdims=True)
        # F.normalize(eps=1e-12): p / max(||p||, 1e-12) == p * rsqrt(max(||p||^2, 1e-24))
        p_n = p * jax.lax.rsqrt(jnp.maximum(sumsq, 1e-24))
        phase_bias = jnp.einsum('bqd,bkd->bqk', p_n, p_n,
                                preferred_element_type=jnp.float32)   # [Bt, k, k]
        # Apply the scalar phase_scale once on the small [Bt,k,k] bias (SMEM read),
        # then broadcast to heads — nhead x fewer multiplies than scaling logits.
        sbias = scale_ref[0, 0] * phase_bias
        bias = jnp.broadcast_to(sbias[:, None, :, :],
                                (Bt, nhead, k, k)).reshape(Bt * nhead, k, k)

        # ---- batched attention: all heads in one dot_general / softmax -------
        logits = jnp.einsum('hqd,hkd->hqk', q3, k3,
                            preferred_element_type=jnp.float32)  # [Bt*nhead, k, k]
        logits = logits + bias
        m = jnp.max(logits, axis=-1, keepdims=True)
        e = jnp.exp(logits - m)
        s = jnp.sum(e, axis=-1, keepdims=True)
        # approx=False keeps the attention weights bit-close to the reference;
        # flip to approx=True (EUP vrcp) if they are only consumed downstream.
        w = e * pl.reciprocal(s, approx=False)
        # TODO(synk): attention dropout omitted (eval-mode / p=0 semantics).

        # Single store of every head's attention weights (no per-head stores).
        attn_ref[...] = w.reshape(Bt, nhead, k, k).astype(attn_ref.dtype)

        ctx = jnp.einsum('hqk,hkd->hqd', w, v3,
                         preferred_element_type=jnp.float32)     # [Bt*nhead, k, hd]

        # ---- output projection: per-head weight slab, sum over heads ---------
        wo3 = wo3_ref[...]                                       # [nhead, hd, d_model]
        if Bt > 1:
            wo3 = jnp.broadcast_to(
                wo3[None], (Bt, nhead, head_dim, d_model)
            ).reshape(Bt * nhead, head_dim, d_model)
        outh = jnp.einsum('hqd,hdm->hqm', ctx, wo3,
                          preferred_element_type=jnp.float32)    # [Bt*nhead, k, d_model]
        out = jnp.sum(outh.reshape(Bt, nhead, k, d_model), axis=1) + bo_ref[0]
        out_ref[...] = out.astype(out_ref.dtype)

    return kernel


def _fuse_params(params, nhead):
    """Wrapper-side layout plumbing: fused QKV weight and per-head out-proj."""
    wq, bq, wk, bk, wv, bv, wo, bo, phase_scale = params
    d_model = wq.shape[0]
    hd = d_model // nhead
    inv = 1.0 / math.sqrt(hd)
    # Fold the 1/sqrt(head_dim) query scaling into Wq / bq.
    wq_h = (wq * inv).reshape(d_model, nhead, hd)
    wk_h = wk.reshape(d_model, nhead, hd)
    wv_h = wv.reshape(d_model, nhead, hd)
    w_qkv = jnp.concatenate([wq_h, wk_h, wv_h], axis=-1).reshape(d_model, 3 * d_model)
    bq_h = (bq * inv).reshape(nhead, hd)
    bk_h = bk.reshape(nhead, hd)
    bv_h = bv.reshape(nhead, hd)
    b_qkv = jnp.concatenate([bq_h, bk_h, bv_h], axis=-1).reshape(1, 3 * d_model)
    wo3 = wo.reshape(nhead, hd, d_model)     # wo3[h] = wo[h*hd:(h+1)*hd, :]
    return w_qkv, b_qkv, wo3, bo, phase_scale


def _pick_batch_block(B: int, max_block: int = 8) -> int:
    """Fold batches per grid step, but keep >=2 steps (v7x has 2 TensorCores)."""
    best = 1
    for d in range(1, min(B, max_block) + 1):
        if B % d == 0 and B // d >= 2:
            best = d
    return best


@functools.partial(jax.jit, static_argnames=("nhead", "batch_block"))
def phase_similarity_transformer_layer(content, phase, params, nhead,
                                       batch_block=None):
    """Pallas forward pass. Returns (out [B,k,d_model], attn [B,nhead,k,k])."""
    B, k, d_model = content.shape
    _, _, phase_dim = phase.shape
    head_dim = d_model // nhead
    assert head_dim * nhead == d_model

    w_qkv, b_qkv, wo3, bo, phase_scale = _fuse_params(params, nhead)

    Bt = batch_block if batch_block is not None else _pick_batch_block(B)
    assert B % Bt == 0
    grid = (B // Bt,)

    kernel = _make_kernel(Bt, k, d_model, nhead, head_dim)

    def const_spec(shape):
        return pl.BlockSpec(shape, lambda b, _s=shape: (0,) * len(_s))

    in_specs = [
        pl.BlockSpec((Bt, k, d_model), lambda b: (b, 0, 0)),      # content
        pl.BlockSpec((Bt, k, phase_dim), lambda b: (b, 0, 0)),    # phase
        const_spec((d_model, 3 * d_model)),                       # fused Wqkv
        const_spec((1, 3 * d_model)),                             # fused bqkv
        const_spec((nhead, head_dim, d_model)),                   # per-head Wo
        const_spec((1, d_model)),                                 # bo
        pl.BlockSpec((1, 1), lambda b: (0, 0),
                     memory_space=pltpu.MemorySpace.SMEM),        # phase_scale
    ]
    out_specs = [
        pl.BlockSpec((Bt, k, d_model), lambda b: (b, 0, 0)),
        pl.BlockSpec((Bt, nhead, k, k), lambda b: (b, 0, 0, 0)),
    ]
    out_shape = [
        jax.ShapeDtypeStruct((B, k, d_model), jnp.float32),
        jax.ShapeDtypeStruct((B, nhead, k, k), jnp.float32),
    ]

    fn = pl.pallas_call(
        kernel,
        grid=grid,
        in_specs=in_specs,
        out_specs=out_specs,
        out_shape=out_shape,
        compiler_params=pltpu.CompilerParams(
            dimension_semantics=("parallel",)),
    )
    out, attn = fn(content, phase, w_qkv, b_qkv, wo3, bo, phase_scale)
    return out, attn


def reference_forward(content, phase, params, nhead):
    """Plain-JAX reference mirroring the PyTorch module (eval mode)."""
    B, k, d_model = content.shape
    head_dim = d_model // nhead
    wq, bq, wk, bk, wv, bv, wo, bo, phase_scale = params

    def shape_heads(x):
        return jnp.transpose(x.reshape(B, k, nhead, head_dim), (0, 2, 1, 3))

    q = shape_heads(content @ wq + bq[0]) / math.sqrt(head_dim)
    k_ = shape_heads(content @ wk + bk[0])
    v = shape_heads(content @ wv + bv[0])
    logits = jnp.einsum("bhqd,bhkd->bhqk", q, k_)
    p_n = phase / jnp.maximum(
        jnp.linalg.norm(phase, axis=-1, keepdims=True), 1e-12)
    phase_bias = jnp.einsum("bqd,bkd->bqk", p_n, p_n)[:, None, :, :]
    logits = logits + phase_scale[0, 0] * phase_bias
    attn = jax.nn.softmax(logits, axis=-1)
    attn_out = jnp.einsum("bhqk,bhkd->bhqd", attn, v)
    attn_out = jnp.transpose(attn_out, (0, 2, 1, 3)).reshape(B, k, d_model)
    out = attn_out @ wo + bo[0]
    return out, attn


def init_params(key, d_model, phase_dim, initial_phase_scale=1.0):
    """Deterministic synthetic parameters (nn.Linear-like, pre-transposed [in,out])."""
    keys = jax.random.split(key, 8)
    bound = 1.0 / math.sqrt(d_model)

    def lin(kw, kb):
        w = jax.random.uniform(kw, (d_model, d_model), jnp.float32, -bound, bound)
        b = jax.random.uniform(kb, (1, d_model), jnp.float32, -bound, bound)
        return w, b

    wq, bq = lin(keys[0], keys[1])
    wk, bk = lin(keys[2], keys[3])
    wv, bv = lin(keys[4], keys[5])
    wo, bo = lin(keys[6], keys[7])
    phase_scale = jnp.full((1, 1), initial_phase_scale, jnp.float32)
    return (wq, bq, wk, bk, wv, bv, wo, bo, phase_scale)


if __name__ == "__main__":
    B, k, d_model, nhead, phase_dim = 2, 8, 32, 4, 16

    key = jax.random.PRNGKey(0)
    k_c, k_p, k_params = jax.random.split(key, 3)
    content = jax.random.normal(k_c, (B, k, d_model), jnp.float32)
    phase = jax.random.normal(k_p, (B, k, phase_dim), jnp.float32)
    params = init_params(k_params, d_model, phase_dim, initial_phase_scale=1.0)

    out, attn = phase_similarity_transformer_layer(content, phase, params, nhead)
    out = jax.block_until_ready(out)
    attn = jax.block_until_ready(attn)

    ref_out, ref_attn = reference_forward(content, phase, params, nhead)
    assert out.shape == (B, k, d_model)
    assert attn.shape == (B, nhead, k, k)
    assert jnp.allclose(out, ref_out, atol=1e-4, rtol=1e-4)
    assert jnp.allclose(attn, ref_attn, atol=1e-4, rtol=1e-4)

    print("KERNEL_OK")
</pallas_src>

<mosaic_0001>
module attributes {stable_mosaic.version = 11 : i64} {
  func.func @kernel(%arg0: i32, %arg1: memref<1x8x32xf32, #tpu.memory_space<vmem>>, %arg2: memref<1x8x16xf32, #tpu.memory_space<vmem>>, %arg3: memref<32x96xf32, #tpu.memory_space<vmem>>, %arg4: memref<1x96xf32, #tpu.memory_space<vmem>>, %arg5: memref<4x8x32xf32, #tpu.memory_space<vmem>>, %arg6: memref<1x32xf32, #tpu.memory_space<vmem>>, %arg7: memref<1x1xf32, #tpu.memory_space<smem>>, %arg8: memref<1x8x32xf32, #tpu.memory_space<vmem>>, %arg9: memref<1x4x8x8xf32, #tpu.memory_space<vmem>>) attributes {dimension_semantics = [#tpu.dimension_semantics<parallel>], iteration_bounds = array<i64: 2>, scalar_prefetch = 0 : i64, scratch_operands = 0 : i64, tpu.core_type = #tpu.core_type<tc>, window_params = [{transform_indices = @transform_0, window_bounds = array<i64: 1, 8, 32>}, {transform_indices = @transform_1, window_bounds = array<i64: 1, 8, 16>}, {pipeline_mode = #tpu.pipeline_mode<synchronous>, transform_indices = @transform_2, window_bounds = array<i64: 32, 96>}, {pipeline_mode = #tpu.pipeline_mode<synchronous>, transform_indices = @transform_3, window_bounds = array<i64: 1, 96>}, {pipeline_mode = #tpu.pipeline_mode<synchronous>, transform_indices = @transform_4, window_bounds = array<i64: 4, 8, 32>}, {pipeline_mode = #tpu.pipeline_mode<synchronous>, transform_indices = @transform_5, window_bounds = array<i64: 1, 32>}, {transform_indices = @transform_6, window_bounds = array<i64: 1, 1>}, {transform_indices = @transform_7, window_bounds = array<i64: 1, 8, 32>}, {transform_indices = @transform_8, window_bounds = array<i64: 1, 4, 8, 8>}]} {
    %c0 = arith.constant 0 : index
    %c0_0 = arith.constant 0 : index
    %c0_1 = arith.constant 0 : index
    %0 = vector.load %arg1[%c0, %c0_0, %c0_1] : memref<1x8x32xf32, #tpu.memory_space<vmem>>, vector<1x8x32xf32>
    %1 = vector.shape_cast %0 : vector<1x8x32xf32> to vector<8x32xf32>
    %c0_2 = arith.constant 0 : index
    %c0_3 = arith.constant 0 : index
    %2 = vector.load %arg3[%c0_2, %c0_3] : memref<32x96xf32, #tpu.memory_space<vmem>>, vector<32x96xf32>
    %cst = arith.constant dense<0.000000e+00> : vector<8x96xf32>
    %3 = tpu.matmul %1, %2, %cst {dimension_numbers = #tpu.dot_dimension_numbers<[1], [0], [0], [1], [0, 0, 1, 1], [], []>} : vector<8x32xf32>, vector<32x96xf32>, vector<8x96xf32> -> vector<8x96xf32>
    %c0_4 = arith.constant 0 : index
    %c0_5 = arith.constant 0 : index
    %4 = vector.load %arg4[%c0_4, %c0_5] : memref<1x96xf32, #tpu.memory_space<vmem>>, vector<1x96xf32>
    %5 = vector.shape_cast %4 : vector<1x96xf32> to vector<96xf32>
    %6 = vector.shape_cast %5 : vector<96xf32> to vector<1x96xf32>
    %7 = vector.broadcast %6 : vector<1x96xf32> to vector<8x96xf32>
    %8 = arith.addf %3, %7 : vector<8x96xf32>
    %9 = vector.extract_strided_slice %8 {offsets = [0, 0], sizes = [8, 24], strides = [1, 1]} : vector<8x96xf32> to vector<8x24xf32>
    %10 = vector.extract_strided_slice %8 {offsets = [0, 24], sizes = [8, 24], strides = [1, 1]} : vector<8x96xf32> to vector<8x24xf32>
    %11 = vector.extract_strided_slice %8 {offsets = [0, 48], sizes = [8, 24], strides = [1, 1]} : vector<8x96xf32> to vector<8x24xf32>
    %12 = vector.extract_strided_slice %8 {offsets = [0, 72], sizes = [8, 24], strides = [1, 1]} : vector<8x96xf32> to vector<8x24xf32>
    %13 = vector.shape_cast %9 : vector<8x24xf32> to vector<1x8x24xf32>
    %14 = vector.shape_cast %10 : vector<8x24xf32> to vector<1x8x24xf32>
    %15 = vector.shape_cast %11 : vector<8x24xf32> to vector<1x8x24xf32>
    %16 = vector.shape_cast %12 : vector<8x24xf32> to vector<1x8x24xf32>
    %17 = tpu.concatenate %13, %14, %15, %16 in 0 : vector<1x8x24xf32>, vector<1x8x24xf32>, vector<1x8x24xf32>, vector<1x8x24xf32> -> vector<4x8x24xf32>
    %18 = vector.extract_strided_slice %17 {offsets = [0, 0, 0], sizes = [4, 8, 8], strides = [1, 1, 1]} : vector<4x8x24xf32> to vector<4x8x8xf32>
    %19 = vector.extract_strided_slice %17 {offsets = [0, 0, 8], sizes = [4, 8, 8], strides = [1, 1, 1]} : vector<4x8x24xf32> to vector<4x8x8xf32>
    %20 = vector.extract_strided_slice %17 {offsets = [0, 0, 16], sizes = [4, 8, 8], strides = [1, 1, 1]} : vector<4x8x24xf32> to vector<4x8x8xf32>
    %c0_6 = arith.constant 0 : index
    %c0_7 = arith.constant 0 : index
    %c0_8 = arith.constant 0 : index
    %21 = vector.load %arg2[%c0_6, %c0_7, %c0_8] : memref<1x8x16xf32, #tpu.memory_space<vmem>>, vector<1x8x16xf32>
    %22 = arith.mulf %21, %21 : vector<1x8x16xf32>
    %cst_9 = arith.constant dense<0.000000e+00> : vector<1x8xf32>
    %23 = vector.multi_reduction <add>, %22, %cst_9 [2] : vector<1x8x16xf32> to vector<1x8xf32>
    %24 = vector.shape_cast %23 : vector<1x8xf32> to vector<1x8x1xf32>
    %cst_10 = arith.constant 1.000000e-24 : f32
    %25 = vector.broadcast %cst_10 : f32 to vector<1x8x1xf32>
    %26 = arith.maximumf %24, %25 : vector<1x8x1xf32>
    %27 = math.rsqrt %26 : vector<1x8x1xf32>
    %28 = vector.broadcast %27 : vector<1x8x1xf32> to vector<1x8x16xf32>
    %29 = arith.mulf %21, %28 : vector<1x8x16xf32>
    "tpu.trace_start"() <{level = 10 : i32, message = "bqd,bkd->bqk"}> : () -> ()
    %cst_11 = arith.constant dense<0.000000e+00> : vector<1x8x8xf32>
    %30 = tpu.matmul %29, %29, %cst_11 {dimension_numbers = #tpu.dot_dimension_numbers<[2], [2], [1], [1], [0, 0, 0, 1, 1, 1], [0], [0]>} : vector<1x8x16xf32>, vector<1x8x16xf32>, vector<1x8x8xf32> -> vector<1x8x8xf32>
    "tpu.trace_stop"() : () -> ()
    %c0_12 = arith.constant 0 : index
    %c0_13 = arith.constant 0 : index
    %31 = memref.load %arg7[%c0_12, %c0_13] : memref<1x1xf32, #tpu.memory_space<smem>>
    %32 = vector.broadcast %31 : f32 to vector<1x8x8xf32>
    %33 = arith.mulf %32, %30 : vector<1x8x8xf32>
    %34 = vector.shape_cast %33 : vector<1x8x8xf32> to vector<1x1x8x8xf32>
    %35 = vector.shape_cast %34 : vector<1x1x8x8xf32> to vector<1x1x8x8xf32>
    %36 = vector.broadcast %35 : vector<1x1x8x8xf32> to vector<1x4x8x8xf32>
    %37 = vector.shape_cast %36 : vector<1x4x8x8xf32> to vector<4x8x8xf32>
    "tpu.trace_start"() <{level = 10 : i32, message = "hqd,hkd->hqk"}> : () -> ()
    %cst_14 = arith.constant dense<0.000000e+00> : vector<4x8x8xf32>
    %38 = tpu.matmul %18, %19, %cst_14 {dimension_numbers = #tpu.dot_dimension_numbers<[2], [2], [1], [1], [0, 0, 0, 1, 1, 1], [0], [0]>} : vector<4x8x8xf32>, vector<4x8x8xf32>, vector<4x8x8xf32> -> vector<4x8x8xf32>
    "tpu.trace_stop"() : () -> ()
    %39 = arith.addf %38, %37 : vector<4x8x8xf32>
    %cst_15 = arith.constant dense<0xFF800000> : vector<4x8xf32>
    %40 = vector.multi_reduction <maximumf>, %39, %cst_15 [2] : vector<4x8x8xf32> to vector<4x8xf32>
    %41 = vector.shape_cast %40 : vector<4x8xf32> to vector<4x8x1xf32>
    %42 = vector.broadcast %41 : vector<4x8x1xf32> to vector<4x8x8xf32>
    %43 = arith.subf %39, %42 : vector<4x8x8xf32>
    %44 = math.exp %43 : vector<4x8x8xf32>
    %cst_16 = arith.constant dense<0.000000e+00> : vector<4x8xf32>
    %45 = vector.multi_reduction <add>, %44, %cst_16 [2] : vector<4x8x8xf32> to vector<4x8xf32>
    %46 = vector.shape_cast %45 : vector<4x8xf32> to vector<4x8x1xf32>
    %47 = tpu.reciprocal %46 : vector<4x8x1xf32> -> vector<4x8x1xf32>
    %48 = vector.broadcast %47 : vector<4x8x1xf32> to vector<4x8x8xf32>
    %49 = arith.mulf %44, %48 : vector<4x8x8xf32>
    %50 = vector.shape_cast %49 : vector<4x8x8xf32> to vector<1x4x8x8xf32>
    %c0_17 = arith.constant 0 : index
    %c0_18 = arith.constant 0 : index
    %c0_19 = arith.constant 0 : index
    %c0_20 = arith.constant 0 : index
    %51 = vector.load %arg9[%c0_17, %c0_18, %c0_19, %c0_20] : memref<1x4x8x8xf32, #tpu.memory_space<vmem>>, vector<1x4x8x8xf32>
    tpu.vector_store %arg9[%c0_17, %c0_18, %c0_19, %c0_20], %50 {strides = array<i32>} : memref<1x4x8x8xf32, #tpu.memory_space<vmem>>, vector<1x4x8x8xf32>,
    "tpu.trace_start"() <{level = 10 : i32, message = "hqk,hkd->hqd"}> : () -> ()
    %cst_21 = arith.constant dense<0.000000e+00> : vector<4x8x8xf32>
    %52 = tpu.matmul %49, %20, %cst_21 {dimension_numbers = #tpu.dot_dimension_numbers<[2], [1], [1], [2], [0, 0, 0, 1, 1, 2], [0], [0]>} : vector<4x8x8xf32>, vector<4x8x8xf32>, vector<4x8x8xf32> -> vector<4x8x8xf32>
    "tpu.trace_stop"() : () -> ()
    %c0_22 = arith.constant 0 : index
    %c0_23 = arith.constant 0 : index
    %c0_24 = arith.constant 0 : index
    %53 = vector.load %arg5[%c0_22, %c0_23, %c0_24] : memref<4x8x32xf32, #tpu.memory_space<vmem>>, vector<4x8x32xf32>
    "tpu.trace_start"() <{level = 10 : i32, message = "hqd,hdm->hqm"}> : () -> ()
    %cst_25 = arith.constant dense<0.000000e+00> : vector<4x8x32xf32>
    %54 = tpu.matmul %52, %53, %cst_25 {dimension_numbers = #tpu.dot_dimension_numbers<[2], [1], [1], [2], [0, 0, 0, 1, 1, 2], [0], [0]>} : vector<4x8x8xf32>, vector<4x8x32xf32>, vector<4x8x32xf32> -> vector<4x8x32xf32>
    "tpu.trace_stop"() : () -> ()
    %55 = vector.shape_cast %54 : vector<4x8x32xf32> to vector<1x4x8x32xf32>
    %cst_26 = arith.constant dense<0.000000e+00> : vector<1x8x32xf32>
    %56 = vector.multi_reduction <add>, %55, %cst_26 [1] : vector<1x4x8x32xf32> to vector<1x8x32xf32>
    %c0_27 = arith.constant 0 : index
    %c0_28 = arith.constant 0 : index
    %57 = vector.load %arg6[%c0_27, %c0_28] : memref<1x32xf32, #tpu.memory_space<vmem>>, vector<1x32xf32>
    %58 = vector.shape_cast %57 : vector<1x32xf32> to vector<32xf32>
    %59 = vector.shape_cast %58 : vector<32xf32> to vector<1x1x32xf32>
    %60 = vector.broadcast %59 : vector<1x1x32xf32> to vector<1x8x32xf32>
    %61 = arith.addf %56, %60 : vector<1x8x32xf32>
    %c0_29 = arith.constant 0 : index
    %c0_30 = arith.constant 0 : index
    %c0_31 = arith.constant 0 : index
    %62 = vector.load %arg8[%c0_29, %c0_30, %c0_31] : memref<1x8x32xf32, #tpu.memory_space<vmem>>, vector<1x8x32xf32>
    tpu.vector_store %arg8[%c0_29, %c0_30, %c0_31], %61 {strides = array<i32>} : memref<1x8x32xf32, #tpu.memory_space<vmem>>, vector<1x8x32xf32>,
    return
  }
  func.func @transform_0(%arg0: i32) -> (i32, i32, i32) {
    %c0_i32 = arith.constant 0 : i32
    %c0_i32_0 = arith.constant 0 : i32
    %c0_i32_1 = arith.constant 0 : i32
    return %arg0, %c0_i32, %c0_i32_0 : i32, i32, i32
  }
  func.func @transform_1(%arg0: i32) -> (i32, i32, i32) {
    %c0_i32 = arith.constant 0 : i32
    %c0_i32_0 = arith.constant 0 : i32
    %c0_i32_1 = arith.constant 0 : i32
    return %arg0, %c0_i32, %c0_i32_0 : i32, i32, i32
  }
  func.func @transform_2(%arg0: i32) -> (i32, i32) {
    %c0_i32 = arith.constant 0 : i32
    %c0_i32_0 = arith.constant 0 : i32
    %c0_i32_1 = arith.constant 0 : i32
    return %c0_i32, %c0_i32_0 : i32, i32
  }
  func.func @transform_3(%arg0: i32) -> (i32, i32) {
    %c0_i32 = arith.constant 0 : i32
    %c0_i32_0 = arith.constant 0 : i32
    %c0_i32_1 = arith.constant 0 : i32
    return %c0_i32, %c0_i32_0 : i32, i32
  }
  func.func @transform_4(%arg0: i32) -> (i32, i32, i32) {
    %c0_i32 = arith.constant 0 : i32
    %c0_i32_0 = arith.constant 0 : i32
    %c0_i32_1 = arith.constant 0 : i32
    %c0_i32_2 = arith.constant 0 : i32
    return %c0_i32, %c0_i32_0, %c0_i32_1 : i32, i32, i32
  }
  func.func @transform_5(%arg0: i32) -> (i32, i32) {
    %c0_i32 = arith.constant 0 : i32
    %c0_i32_0 = arith.constant 0 : i32
    %c0_i32_1 = arith.constant 0 : i32
    return %c0_i32, %c0_i32_0 : i32, i32
  }
  func.func @transform_6(%arg0: i32) -> (i32, i32) {
    %c0_i32 = arith.constant 0 : i32
    %c0_i32_0 = arith.constant 0 : i32
    %c0_i32_1 = arith.constant 0 : i32
    return %c0_i32, %c0_i32_0 : i32, i32
  }
  func.func @transform_7(%arg0: i32) -> (i32, i32, i32) {
    %c0_i32 = arith.constant 0 : i32
    %c0_i32_0 = arith.constant 0 : i32
    %c0_i32_1 = arith.constant 0 : i32
    return %arg0, %c0_i32, %c0_i32_0 : i32, i32, i32
  }
  func.func @transform_8(%arg0: i32) -> (i32, i32, i32, i32) {
    %c0_i32 = arith.constant 0 : i32
    %c0_i32_0 = arith.constant 0 : i32
    %c0_i32_1 = arith.constant 0 : i32
    %c0_i32_2 = arith.constant 0 : i32
    return %arg0, %c0_i32, %c0_i32_0, %c0_i32_1 : i32, i32, i32, i32
  }
}

</mosaic_0001>

<bundles_post_ra>
// kernel: phase_similarity_transformer_layer.1
= control target key start
LH: loop header
LB: loop body
LE: loop exit
PB: predicated region body
PF: predicated region fallthrough
CT: control target
= control target key end

     0   :  { %s2275_s0 = inlined_call_operand.vmem [shape: f32[2,8,32], index: 0, kind: input, shape index: {}]   ;;  %s2276_s1 = inlined_call_operand.vmem [shape: f32[2,8,16], index: 1, kind: input, shape index: {}]   ;;  %s2277_s2 = inlined_call_operand.vmem [shape: f32[32,96], index: 2, kind: input, shape index: {}]   ;;  %s2278_s3 = inlined_call_operand.vmem [shape: f32[1,96], index: 3, kind: input, shape index: {}]   ;;  %s2279_s4 = inlined_call_operand.vmem [shape: f32[4,8,32], index: 4, kind: input, shape index: {}]   ;;  %s2280_s5 = inlined_call_operand.vmem [shape: f32[1,32], index: 5, kind: input, shape index: {}]   ;;  %s2281_s6 = inlined_call_operand.<no memory space> [shape: f32[1,1], index: 6, kind: input, shape index: {}]   ;;  %s2282_s7 = inlined_call_operand.hbm [shape: f32[2,8,32], index: 7, kind: output, shape index: {0}]   ;;  %s2283_s8 = inlined_call_operand.hbm [shape: f32[2,4,8,8], index: 8, kind: output, shape index: {1}]  }
   0x1   :  { %14 = sst [smem:[#allocation2]] %s2281_s6 }
   0x2   :  { %15 = vsyncpa [#allocation4], 0 }
   0x3   :  { %17 = vsyncpa [#allocation4 + $0x1], 0 }
   0x4   :  { %18 = vsyncpa [#allocation6], 0 }
   0x5   :  { %20 = vsyncpa [#allocation6 + $0x1], 0  ;;  %s1993_s29 = smov 0   ;;  %s1995_s30 = smov 0  }
   0x6   :  { %s1997_s9 = smov 0   ;;  %s1999_s10 = smov 0  }
   0x7 LB: > { %s2014_s6 = sadd.s32 4294967295, %s1931_s10   ;;  %s1615_s11 = sadd.s32 4294967294, %s1931_s10   ;;  %s1931_s10 = sphi %s1999_s10, %s2289_s10   ;;  %s1927_s9 = sphi %s1997_s9, %s2288_s9   ;;  %s1923_s30 = sphi %s1995_s30, %s2287_s30   ;;  %s1919_s29 = sphi %s1993_s29, %s2286_s29  }
   0x8   : > { %s2018_s12 = sadd.s32 1, %s1931_s10   ;;  %s190_s13 = sadd.s32 1, %s1927_s9 }
   0x9   : > { %s187_s14 = ssub.s32 %s1931_s10, %s2018_s12  ;;  %p200_p0 = scmp.ne.s32.totalorder %s1927_s9, %s1923_s30 }
   0xa   : > { %p188_p1 = scmp.eq.s32.totalorder %s187_s14, 0  ;;  %p201_p2 = scmp.eq.s32.totalorder %s2014_s6, 1 }
   0xb   : > { %p206_p3 = scmp.ne.s32.totalorder %s1923_s30, %s1919_s29  ;;  %p207_p4 = scmp.eq.s32.totalorder %s1615_s11, 1 }
   0xc   : > { %s2029_s15 = scalar_select %p188_p1, %s1927_s9, %s190_s13  }
   0xd   : > { %p2031_p5 = por %p201_p2, %p200_p0  ;;  %p2035_p6 = por %p207_p4, %p206_p3 }
   0xe   : > { %p1618_p7 = scmp.ge.s32.totalorder %s1931_s10, 1  ;;  %p280_p8 = scmp.lt.s32.totalorder %s1931_s10, 3 }
  0x10   : > { %p281_p9 = pnand %p1618_p7, %p280_p8 }
  0x11   : > { %v331_v0 = vld [vmem:[%s2277_s2] sm:$0xff] (!%p281_p9)  ;;  %v332_v1 = vld [vmem:[%s2277_s2 + $0x8] sm:$0xff] (!%p281_p9)  ;;  %v333_v2 = vld [vmem:[%s2277_s2 + $0x10] sm:$0xff] (!%p281_p9)  ;;  %v1933_v3 = vmov (!%p281_p9), 0.0|0.0   ;;  %vm1934_vm0 = vmmov (!%p281_p9), 0   ;;  %v1935_v6 = vmov (!%p281_p9), 0.0  }
  0x12   : > { %284 = sbr.rel (%p281_p9) target bundleno = 1456 (0x5b0), region = 48  ;;  %1759 = vmatprep.subr.bf16.mxu0 (!%p281_p9), %v1933_v3  ;;  %v1760_v4 = vpack.c.bf16 (!%p281_p9), %v332_v1, %v331_v0  ;;  %v334_v5 = vld [vmem:[%s2277_s2 + $0x18] sm:$0xff] (!%p281_p9)  ;;  %1691 = vmatprep.mubr.msk.f32.mxu0 (!%p281_p9), %vm1934_vm0, %v1935_v6  ;;  %p322_p10 = scmp.lt.s32.totalorder (!%p281_p9), %s2014_s6, 1  ;;  %vm342_vm1 = vcmask (!%p281_p9), 261120   ;;  %v1623_v9 = vld [vmem:[%s2278_s3] ss:$0 sm:$0xff] (!%p281_p9) }
  0x13   : > { %1694 = vmatprep.subr.mxu1 (!%p281_p9), %v1935_v6  ;;  %1696 = vmatprep.mubr.msk.f32.mxu1 (!%p281_p9), %vm1934_vm0, %v1935_v6  ;;  %v1763_v7 = vpack.c.bf16 (!%p281_p9), %v334_v5, %v333_v2  ;;  %s1936_s19 = smov (!%p281_p9), 56   ;;  %s1937_s20 = smov (!%p281_p9), 104   ;;  %vm425_vm2 = vcmask (!%p281_p9), 130048   ;;  %vm510_vm3 = vcmask (!%p281_p9), 64512  }
  0x14   : > { %1761 = vmatpush3.bf16.msra.mxu0 (!%p281_p9), %v1760_v4  ;;  %s1938_s21 = smov (!%p281_p9), 80   ;;  %s1939_s22 = smov (!%p281_p9), 120  }
  0x15   : > { %1762 = vmatprep.subr.bf16.mxu0 (!%p281_p9), %v1933_v3  ;;  %s2136_s28 = sand.u32 (!%p281_p9), 1, %s1923_s30  }
  0x16   : > { %s1620_s11 = sshll.u32 (!%p281_p9), %s2136_s28, 5  ;;  %s1483_s18 = scalar_lea.sflag (!%p281_p9), [#allocation6], %s2136_s28 }
  0x18   : > { %1764 = vmatpush3.bf16.msra.mxu0 (!%p281_p9), %v1763_v7 }
  0x19   : > { %s323_s26 = scalar_select %p322_p10, %s2014_s6, 1  ;;  %1704 = vmatprep.subr.mxu0 %v1935_v6 }
  0x1b   : > { %s1621_s27 = sshll.u32 %s323_s26, 3  ;;  %s505_s26 = sld [smem:[#allocation2]] }
  0x1c   : > { %s325_s13 = scalar_lea.vmem %s2275_s0, %s1621_s27  ;;  %s329_s25 = scalar_lea.vmem %s2276_s1, %s1621_s27 }
  0x1d   : > { %v330_v8 = vld [vmem:[%s325_s13] sm:$0xff]  ;;  %s1940_s27 = smov 112   ;;  %s2140_s13 = scalar_lea.vmem [#allocation5], %s1620_s11 }
  0x1e   : > { %1692 = vmatmul.mubr.msk.f32.vlgmr.msra.gmra.mrb[0].mxu0 %vm342_vm1, %v330_v8  ;;  %v423_v13 = vld [vmem:[%s329_s25] sm:$0xff]  ;;  %s1509_s25 = sshll.u32 %s2140_s13, 4  ;;  %s2188_s25 = int_to_ptr.vmem [resolvable:$true] %s1509_s25 }
  0x1f   : > { %1706 = vmatprep.mubr.msk.f32.mxu0 %vm1934_vm0, %v1935_v6  ;;  %v424_v14 = vmul.f32 %v423_v13, %v423_v13 }
  0x21   : > { %v426_v15 = vsel %vm425_vm2, %v424_v14, 0.0  ;;  %v506_v27 = vstv %s505_s26  ;;  %s1651_s26 = sshll.u32 %s2014_s6, 9 }
  0x22   : > { %s2193_s14 = scalar_lea.hbm %s2283_s8, %s1651_s26 }
  0xf1   : > { %v412_v10 = vpop.f32.mrb[0].mxu0 }
  0xf2   : > { %v2070_v11 = vadd.f32 %v1623_v9, %v412_v10  ;;  %v1693_v12 = vpop.f32.mrb[1].mxu0 }
  0xf4   : > { %421 = vrot.lane.b32.xlu1 %v2070_v11, %s1936_s19  ;;  %417 = vrot.lane.b32.xlu0 %v2070_v11, %s1937_s20  ;;  %s1837_s19 = scalar_lea.vmem %s2188_s25, 512  ;;  %s1941_s20 = smov [#allocation5]  }
  0xf5   : > { %p1838_p11 = scmp.ne.s32.totalorder %s2188_s25, %s1837_s19 }
  0xf7   : > { %p1839_p12 = pnand %p1838_p11, %p2031_p5 }
  0xf8   : > { %419 = vrot.lane.b32.xlu0 %v2070_v11, %s1938_s21  ;;  %s1841_s21 = sshll.u32 %s1941_s20, 4  ;;  %s1842_s21 = int_to_ptr.vmem [resolvable:$false] %s1841_s21 }
  0xf9   : > { %p1840_p13 = pneg %p1839_p12  ;;  %p1844_p0 = scmp.lt.s32.totalorder %s2188_s25, %s1842_s21 }
  0xfc   : > { %508 = vrot.lane.b32.xlu0 %v2070_v11, %s1939_s22 }
 0x118   : > { %427 = vadd.xlane.f32.xlu1 %v426_v15 }
 0x166   : > { %v2080_v16 = vpop.permute.xlu0 %417  ;;  %v2086_v18 = vpop.permute.xlu1 %421 }
 0x167   : > { %585 = vrot.lane.b32.xlu0 %v2080_v16, %s1939_s22 }
 0x16a   : > { %v2083_v17 = vpop.permute.xlu0 %419 }
 0x16b   : > { %661 = vrot.lane.b32.xlu0 %v2083_v17, %s1939_s22 }
 0x16e   : > { %v509_v23 = vpop.permute.xlu0 %508 }
 0x16f   : > { %737 = vrot.lane.b32.xlu0 %v2086_v18, %s1939_s22 }
 0x1a5   : > { %v428_v19 = vpop.xlane.xlu1 %427 }
 0x1a6   : > { %v429_v20 = vmax.f32 %v428_v19, 1e-24 }
 0x1a8   : > { %1819 = vrsqrt.f32 %v429_v20  ;;  %v1165_v20 = vld [vmem:[%s2279_s4] sm:$0xff] }
 0x1b2   : > { %v1820_v21 = vpop.eup %1819 }
 0x1b3   : > { %v431_v22 = vmul.f32 %v1820_v21, %v423_v13  ;;  %v1166_v21 = vld [vmem:[%s2279_s4 + $0x8] sm:$0xff] }
 0x1b5   : > { %1695 = vmatpush3.xpose.msk.msra.mxu1 %vm425_vm2, %v431_v22 }
 0x1b6   : > { %1699 = vmatprep.subr.mxu1 %v1935_v6 }
 0x1b8   : > { %1697 = vmatmul.mubr.msk.f32.vlgmr.msra.gmra.mrb[0].mxu1 %vm425_vm2, %v431_v22  ;;  %v1167_v22 = vld [vmem:[%s2279_s4 + $0x10] sm:$0xff] }
 0x1b9   : > { %1700 = vmatpush3.xpose.msk.msra.mxu1 %vm510_vm3, %v509_v23  ;;  %1701 = vmatprep.mubr.msk.f32.mxu1 %vm1934_vm0, %v1935_v6 }
 0x1ba   : > { %1709 = vmatprep.subr.mxu1 %v1935_v6 }
 0x1bc   : > { %1702 = vmatmul.mubr.msk.f32.vlgmr.msra.gmra.mrb[2].mxu1 %vm510_vm3, %v2070_v11 }
 0x1bd   : > { %1711 = vmatprep.mubr.msk.f32.mxu1 %vm1934_vm0, %v1935_v6 }
 0x1d9   : > { %v586_v24 = vpop.permute.xlu0 %585 }
 0x1da   : > { %1705 = vmatpush3.xpose.msk.msra.mxu0 %vm510_vm3, %v586_v24 }
 0x1db   : > { %1714 = vmatprep.subr.mxu0 %v1935_v6 }
 0x1dd   : > { %1707 = vmatmul.mubr.msk.f32.vlgmr.msra.gmra.mrb[2].mxu0 %vm510_vm3, %v2080_v16  ;;  %v662_v25 = vpop.permute.xlu0 %661 }
 0x1de   : > { %1710 = vmatpush3.xpose.msk.msra.mxu1 %vm510_vm3, %v662_v25  ;;  %1716 = vmatprep.mubr.msk.f32.mxu0 %vm1934_vm0, %v1935_v6  ;;  %v1168_v25 = vld [vmem:[%s2279_s4 + $0x18] sm:$0xff] }
 0x1df   : > { %1719 = vmatprep.subr.mxu1 %v1935_v6 }
 0x1e1   : > { %1712 = vmatmul.mubr.msk.f32.vlgmr.msra.gmra.mrb[4].mxu1 %vm510_vm3, %v2083_v17  ;;  %v738_v26 = vpop.permute.xlu0 %737 }
 0x1e2   : > { %1715 = vmatpush3.xpose.msk.msra.mxu0 %vm510_vm3, %v738_v26  ;;  %1721 = vmatprep.mubr.msk.f32.mxu1 %vm1934_vm0, %v1935_v6 }
 0x1e3   : > { %1724 = vmatprep.subr.mxu0 %v1935_v6 }
 0x1e5   : > { %1717 = vmatmul.mubr.msk.f32.vlgmr.msra.gmra.mrb[4].mxu0 %vm510_vm3, %v2086_v18 }
 0x1e6   : > { %1726 = vmatprep.mubr.msk.f32.mxu0 %vm1934_vm0, %v1935_v6 }
 0x28b   : > { %v501_v28 = vpop.f32.mrb[0].mxu1 }
 0x28c   : > { %v507_v29 = vmul.f32 %v506_v27, %v501_v28  ;;  %v1698_v30 = vpop.f32.mrb[1].mxu1 }
 0x28f   : > { %v581_v31 = vpop.f32.mrb[2].mxu1 }
 0x290   : > { %v582_v32 = vadd.f32 %v581_v31, %v507_v29  ;;  %v1703_v33 = vpop.f32.mrb[3].mxu1 }
 0x292   : > { %v813_v34 = vsel %vm510_vm3, %v582_v32, -inf }
 0x293   : > { %814 = vmax.xlane.f32.xlu0 %v813_v34 }
 0x2b0   : > { %v657_v35 = vpop.f32.mrb[2].mxu0 }
 0x2b1   : > { %v658_v36 = vadd.f32 %v657_v35, %v507_v29  ;;  %v1708_v37 = vpop.f32.mrb[3].mxu0 }
 0x2b3   : > { %v816_v38 = vsel %vm510_vm3, %v658_v36, -inf }
 0x2b4   : > { %v733_v39 = vpop.f32.mrb[4].mxu1  ;;  %817 = vmax.xlane.f32.xlu1 %v816_v38 }
 0x2b5   : > { %v734_v40 = vadd.f32 %v733_v39, %v507_v29  ;;  %v1713_v41 = vpop.f32.mrb[5].mxu1 }
 0x2b7   : > { %v819_v42 = vsel %vm510_vm3, %v734_v40, -inf }
 0x2b8   : > { %820 = vmax.xlane.f32.xlu1 %v819_v42  ;;  %v809_v43 = vpop.f32.mrb[4].mxu0 }
 0x2b9   : > { %v810_v44 = vadd.f32 %v809_v43, %v507_v29  ;;  %v1718_v45 = vpop.f32.mrb[5].mxu0 }
 0x2bb   : > { %v822_v46 = vsel %vm510_vm3, %v810_v44, -inf }
 0x2bc   : > { %823 = vmax.xlane.f32.xlu1 %v822_v46 }
 0x2cd   : > { %861 = vrot.lane.b32.xlu1 %v2070_v11, %s1940_s27 }
 0x320   : > { %v815_v47 = vpop.xlane.xlu0 %814 }
 0x321   : > { %v825_v48 = vsub.f32 %v582_v32, %v815_v47 }
 0x323   : > { %v829_v49 = vmul.f32 1.442695, %v825_v48 }
 0x325   : > { %1821 = vpow2.f32 %v829_v49 }
 0x32f   : > { %v1822_v50 = vpop.eup %1821 }
 0x330   : > { %v837_v51 = vsel %vm510_vm3, %v1822_v50, 0.0 }
 0x331   : > { %838 = vadd.xlane.f32.xlu1 %v837_v51 }
 0x341   : > { %v818_v52 = vpop.xlane.xlu1 %817 }
 0x342   : > { %v826_v53 = vsub.f32 %v658_v36, %v818_v52 }
 0x344   : > { %v831_v54 = vmul.f32 1.442695, %v826_v53 }
 0x345   : > { %v821_v55 = vpop.xlane.xlu1 %820 }
 0x346   : > { %1823 = vpow2.f32 %v831_v54  ;;  %v827_v56 = vsub.f32 %v734_v40, %v821_v55 }
 0x348   : > { %v833_v57 = vmul.f32 1.442695, %v827_v56 }
 0x349   : > { %v824_v58 = vpop.xlane.xlu1 %823 }
 0x34a   : > { %1825 = vpow2.f32 %v833_v57  ;;  %v828_v59 = vsub.f32 %v810_v44, %v824_v58 }
 0x34c   : > { %v835_v60 = vmul.f32 1.442695, %v828_v59 }
 0x34d   : > { %v862_v61 = vpop.permute.xlu1 %861 }
 0x34e   : > { %1827 = vpow2.f32 %v835_v60  ;;  %1720 = vmatpush3.msra.mxu1 %v862_v61 }
 0x34f   : > { %1729 = vmatprep.subr.mxu1 %v1935_v6 }
 0x350   : > { %v1824_v62 = vpop.eup %1823 }
 0x351   : > { %v840_v63 = vsel %vm510_vm3, %v1824_v62, 0.0 }
 0x352   : > { %841 = vadd.xlane.f32.xlu0 %v840_v63 }
 0x354   : > { %v1826_v0 = vpop.eup %1825 }
 0x355   : > { %v843_v1 = vsel %vm510_vm3, %v1826_v0, 0.0 }
 0x356   : > { %844 = vadd.xlane.f32.xlu1 %v843_v1 }
 0x358   : > { %v1828_v2 = vpop.eup %1827 }
 0x359   : > { %v846_v3 = vsel %vm510_vm3, %v1828_v2, 0.0 }
 0x35a   : > { %847 = vadd.xlane.f32.xlu0 %v846_v3 }
 0x367   : > { %1013 = vrot.lane.b32.xlu1 %v2083_v17, %s1940_s27 }
 0x36b   : > { %1089 = vrot.lane.b32.xlu1 %v2086_v18, %s1940_s27 }
 0x370   : > { %937 = vrot.lane.b32.xlu0 %v2080_v16, %s1940_s27 }
 0x3be   : > { %v839_v4 = vpop.xlane.xlu1 %838 }
 0x3bf   : > { %1829 = vrcp.f32 %v839_v4 }
 0x3c9   : > { %v1830_v5 = vpop.eup %1829 }
 0x3ca   : > { %v853_v7 = vmul.f32 %v1830_v5, %v1822_v50 }
 0x3cc   : > { %1722 = vmatmul.mubr.msk.f32.vlgmr.msra.gmra.mrb[6].mxu1 %vm510_vm3, %v853_v7  ;;  %857 = vst.msk [vmem:[%s2140_s13] sm:$0xff] %vm510_vm3, %v853_v7 }
 0x3cd   : > { %1731 = vmatprep.mubr.msk.f32.mxu1 %vm1934_vm0, %v1935_v6 }
 0x3df   : > { %v842_v8 = vpop.xlane.xlu0 %841 }
 0x3e0   : > { %1831 = vrcp.f32 %v842_v8 }
 0x3e3   : > { %v845_v9 = vpop.xlane.xlu1 %844 }
 0x3e4   : > { %1833 = vrcp.f32 %v845_v9 }
 0x3e7   : > { %v848_v10 = vpop.xlane.xlu0 %847  ;;  %v1014_v11 = vpop.permute.xlu1 %1013 }
 0x3e8   : > { %1835 = vrcp.f32 %v848_v10  ;;  %1730 = vmatpush3.msra.mxu1 %v1014_v11 }
 0x3e9   : > { %1739 = vmatprep.subr.mxu1 %v1935_v6 }
 0x3ea   : > { %v1832_v12 = vpop.eup %1831 }
 0x3eb   : > { %v854_v13 = vmul.f32 %v1832_v12, %v1824_v62  ;;  %v938_v14 = vpop.permute.xlu0 %937  ;;  %v1090_v15 = vpop.permute.xlu1 %1089 }
 0x3ec   : > { %1725 = vmatpush3.msra.mxu0 %v938_v14 }
 0x3ed   : > { %1727 = vmatmul.mubr.msk.f32.vlgmr.msra.gmra.mrb[6].mxu0 %vm510_vm3, %v854_v13  ;;  %1734 = vmatprep.subr.mxu0 %v1935_v6  ;;  %858 = vst.msk [vmem:[%s2140_s13 + $0x8] sm:$0xff] %vm510_vm3, %v854_v13 }
 0x3ee   : > { %v1834_v16 = vpop.eup %1833  ;;  %1735 = vmatpush3.msra.mxu0 %v1090_v15  ;;  %1736 = vmatprep.mubr.msk.f32.mxu0 %vm1934_vm0, %v1935_v6 }
 0x3ef   : > { %v855_v17 = vmul.f32 %v1834_v16, %v1826_v0  ;;  %1744 = vmatprep.subr.mxu0 %v1935_v6 }
 0x3f1   : > { %1732 = vmatmul.mubr.msk.f32.vlgmr.msra.gmra.mrb[8].mxu1 %vm510_vm3, %v855_v17  ;;  %859 = vst.msk [vmem:[%s2140_s13 + $0x10] sm:$0xff] %vm510_vm3, %v855_v17 }
 0x3f2   : > { %v1836_v18 = vpop.eup %1835  ;;  %1741 = vmatprep.mubr.msk.f32.mxu1 %vm1934_vm0, %v1935_v6  ;;  %1740 = vmatpush3.msra.mxu1 %v1165_v20 }
 0x3f3   : > { %v856_v19 = vmul.f32 %v1836_v18, %v1828_v2  ;;  %1749 = vmatprep.subr.mxu1 %v1935_v6 }
 0x3f5   : > { %1737 = vmatmul.mubr.msk.f32.vlgmr.msra.gmra.mrb[8].mxu0 %vm510_vm3, %v856_v19  ;;  %860 = vst.msk [vmem:[%s2140_s13 + $0x18] sm:$0xff] %vm510_vm3, %v856_v19  ;;  %s1843_s13 = scalar_lea.vmem %s1842_s21, 1024 }
 0x3f6   : > { %1746 = vmatprep.mubr.msk.f32.mxu0 %vm1934_vm0, %v1935_v6  ;;  %1745 = vmatpush3.msra.mxu0 %v1166_v21  ;;  %p1845_p1 = scmp.lt.s32.totalorder %s1843_s13, %s1837_s19 }
 0x3f7   : > { %1754 = vmatprep.subr.mxu0 %v1935_v6 }
 0x3f8   : > { %p1846_p2 = por %p1845_p1, %p1844_p0 }
 0x3fa   : > { %p1847_p3 = pnand %p1846_p2, %p1840_p13 }
 0x49f   : > { %v933_v23 = vpop.f32.mrb[6].mxu1 }
 0x4a0   : > { %v1723_v24 = vpop.f32.mrb[7].mxu1  ;;  %1742 = vmatmul.mubr.msk.f32.vlgmr.msra.gmra.mrb[10].mxu1 %vm510_vm3, %v933_v23 }
 0x4a1   : > { %1750 = vmatpush3.msra.mxu1 %v1167_v22  ;;  %1751 = vmatprep.mubr.msk.f32.mxu1 %vm1934_vm0, %v1935_v6 }
 0x4c0   : > { %v1009_v26 = vpop.f32.mrb[6].mxu0 }
 0x4c1   : > { %v1728_v27 = vpop.f32.mrb[7].mxu0  ;;  %1747 = vmatmul.mubr.msk.f32.vlgmr.msra.gmra.mrb[10].mxu0 %vm510_vm3, %v1009_v26 }
 0x4c2   : > { %1755 = vmatpush3.msra.mxu0 %v1168_v25  ;;  %1756 = vmatprep.mubr.msk.f32.mxu0 %vm1934_vm0, %v1935_v6 }
 0x4c4   : > { %v1085_v28 = vpop.f32.mrb[8].mxu1 }
 0x4c5   : > { %v1733_v29 = vpop.f32.mrb[9].mxu1  ;;  %1752 = vmatmul.mubr.msk.f32.vlgmr.msra.gmra.mrb[12].mxu1 %vm510_vm3, %v1085_v28 }
 0x4c8   : > { %v1161_v30 = vpop.f32.mrb[8].mxu0 }
 0x4c9   : > { %v1738_v31 = vpop.f32.mrb[9].mxu0  ;;  %1757 = vmatmul.mubr.msk.f32.vlgmr.msra.gmra.mrb[12].mxu0 %vm510_vm3, %v1161_v30 }
 0x4ca   : > { %1850 = shalt.err (!%p1847_p3)
}
 0x4cb   : > { %s1851_s22 = scalar_lea.hbm %s2193_s14, 512  ;;  %s1855_s26 = scalar_lea.hbm %s2283_s8, 1024 }
 0x4cc   : > { %p1852_p4 = scmp.ne.s32.totalorder %s2193_s14, %s1851_s22  ;;  %p1856_p9 = scmp.lt.u32.totalorder %s2193_s14, %s2283_s8 }
 0x4cd   : > { %p1857_p10 = scmp.lt.u32.totalorder %s1855_s26, %s1851_s22  ;;  %p1859_p12 = scmp.lt.u32.totalorder %s1851_s22, %s2193_s14 }
 0x4ce   : > { %p1853_p7 = pnand %p1852_p4, %p2031_p5 }
 0x4cf   : > { %p1858_p11 = por %p1857_p10, %p1856_p9 }
 0x4d0   : > { %p1854_p8 = pneg %p1853_p7 }
 0x4d1   : > { %p1860_p13 = por %p1859_p12, %p1858_p11 }
 0x4d3   : > { %p1861_p0 = pnand %p1860_p13, %p1854_p8 }
 0x4d5   : > { %1864 = shalt.err (!%p1861_p0)
}
 0x4d6   : > { %s1942_s19 = smov 128   ;;  %s1943_s20 = smov 8   ;;  %v1643_v44 = vld [vmem:[%s2280_s5] ss:$0 sm:$0xff] }
 0x4d7   : > { %1766 = dma.vmem_to_hbm [thread:$0]  (%p2031_p5), %s2188_s25, 512, %s2193_s14, %s1483_s18, %s1942_s19, %s1942_s19, %s1943_s20  }
 0x4d8   : > { %s1619_s21 = sshll.u32 %s2136_s28, 3  ;;  %s1646_s18 = sshll.u32 %s2014_s6, 7 }
 0x4d9   : > { %s314_s13 = scalar_lea.vmem [#allocation3], %s1619_s21  ;;  %s2231_s26 = scalar_lea.hbm %s2282_s7, %s1646_s18 }
 0x4da   : > { %s1496_s22 = sshll.u32 %s314_s13, 4  ;;  %s1478_s27 = scalar_lea.sflag [#allocation4], %s2136_s28  ;;  %s2233_s22 = int_to_ptr.vmem [resolvable:$true] %s1496_s22 }
 0x4db   : > { %s1865_s11 = scalar_lea.vmem %s2233_s22, 128  ;;  %s1944_s6 = smov [#allocation3]  }
 0x4dc   : > { %p1866_p1 = scmp.ne.s32.totalorder %s2233_s22, %s1865_s11  ;;  %s1869_s19 = sshll.u32 %s1944_s6, 4  ;;  %s1870_s19 = int_to_ptr.vmem [resolvable:$false] %s1869_s19 }
 0x4dd   : > { %s1871_s20 = scalar_lea.vmem %s1870_s19, 256  ;;  %p1872_p4 = scmp.lt.s32.totalorder %s2233_s22, %s1870_s19 }
 0x4de   : > { %p1867_p2 = pnand %p1866_p1, %p2031_p5  ;;  %p1873_p7 = scmp.lt.s32.totalorder %s1871_s20, %s1865_s11 }
 0x4e0   : > { %p1868_p3 = pneg %p1867_p2  ;;  %p1874_p8 = por %p1873_p7, %p1872_p4 }
 0x4e2   : > { %p1875_p9 = pnand %p1874_p8, %p1868_p3 }
 0x573   : > { %v1238_v6 = vpop.f32.mrb[10].mxu1 }
 0x574   : > { %v1743_v32 = vpop.f32.mrb[11].mxu1  ;;  %v1461_v34 = vsel %vm342_vm1, %v1238_v6, 0.0 }
 0x594   : > { %v1311_v33 = vpop.f32.mrb[10].mxu0 }
 0x595   : > { %v1462_v35 = vsel %vm342_vm1, %v1311_v33, 0.0  ;;  %v1748_v36 = vpop.f32.mrb[11].mxu0 }
 0x596   : > { %v1463_v37 = vadd.f32 %v1462_v35, %v1461_v34 }
 0x598   : > { %v1384_v38 = vpop.f32.mrb[12].mxu1 }
 0x599   : > { %v1464_v39 = vsel %vm342_vm1, %v1384_v38, 0.0  ;;  %v1753_v40 = vpop.f32.mrb[13].mxu1 }
 0x59a   : > { %v1465_v41 = vadd.f32 %v1464_v39, %v1463_v37 }
 0x59c   : > { %v1457_v42 = vpop.f32.mrb[12].mxu0 }
 0x59d   : > { %v1466_v43 = vsel %vm342_vm1, %v1457_v42, 0.0  ;;  %v1758_v45 = vpop.f32.mrb[13].mxu0 }
 0x59e   : > { %v1467_v46 = vadd.f32 %v1466_v43, %v1465_v41 }
 0x5a0   : > { %v1475_v47 = vadd.f32 %v1643_v44, %v1467_v46 }
 0x5a2   : > { %1476 = vst.msk [vmem:[%s314_s13] sm:$0xff] %vm342_vm1, %v1475_v47 }
 0x5a3   : > { %1878 = shalt.err (!%p1875_p9)
}
 0x5a4   : > { %s1879_s28 = scalar_lea.hbm %s2231_s26, 128  ;;  %s1883_s14 = scalar_lea.hbm %s2282_s7, 256 }
 0x5a5   : > { %p1880_p10 = scmp.ne.s32.totalorder %s2231_s26, %s1879_s28  ;;  %p1884_p13 = scmp.lt.u32.totalorder %s2231_s26, %s2282_s7 }
 0x5a6   : > { %p1885_p0 = scmp.lt.u32.totalorder %s1883_s14, %s1879_s28  ;;  %p1887_p2 = scmp.lt.u32.totalorder %s1879_s28, %s2231_s26 }
 0x5a7   : > { %p1881_p11 = pnand %p1880_p10, %p2031_p5 }
 0x5a8   : > { %p1886_p1 = por %p1885_p0, %p1884_p13 }
 0x5a9   : > { %p1882_p12 = pneg %p1881_p11 }
 0x5aa   : > { %p1888_p3 = por %p1887_p2, %p1886_p1 }
 0x5ac   : > { %p1889_p4 = pnand %p1888_p3, %p1882_p12 }
 0x5ae   : > { %1892 = shalt.err (!%p1889_p4)
}
 0x5af   : > { %1765 = dma.vmem_to_hbm [thread:$0]  (%p2031_p5), %s2233_s22, 128, %s2231_s26, %s1478_s27  }
 0x5b0 PF: > { %p1776_p7 = scmp.ge.s32.totalorder %s1931_s10, 2  ;;  %s1524_s23 = sand.u32 1, %s1919_s29  }
 0x5b1   : > { %s1525_s24 = scalar_lea.sflag [#allocation4], %s1524_s23 }
 0x5b2   : > { %p1770_p8 = pnand %p1776_p7, %p2035_p6 }
 0x5b4   : > { %1910 = dma.done.wait (!%p1770_p8), %s1525_s24, 128  }
 0x5b5   : > { %1912 = vsyncadd (!%p1770_p8), %s1525_s24, 4294967168  ;;  %s1534_s11 = scalar_lea.sflag [#allocation6], %s1524_s23 }
 0x5b6   : > { %1914 = dma.done.wait (!%p1770_p8), %s1534_s11, 512  }
 0x5b7   : > { %1916 = vsyncadd (!%p1770_p8), %s1534_s11, 4294966784  ;;  %p23_p5 = scmp.ge.s32.totalorder %s2018_s12, 4   ;;  %s2286_s29 = smov %s1923_s30 }
 0x5b8   : > { %s2287_s30 = smov %s1927_s9  ;;  %s2288_s9 = smov %s2029_s15 }
 0x5b9   : > { %s2289_s10 = smov %s2018_s12  ;;  %25 = sbr.rel (!%p23_p5) target bundleno = 7 (0x7), region = 103 }
 0x5c0   :  { %1539 = vsyncpa [#allocation4], 1 }
 0x5c1   :  { %1541 = vsyncpa [#allocation4 + $0x1], 1 }
 0x5c2   :  { %1542 = vsyncpa [#allocation6], 1 }
 0x5c3   :  { %1544 = vsyncpa [#allocation6 + $0x1], 1 }

</bundles_post_ra>
